<compile_context>
chip_gen: v7x
topology: tpu7x:2x2x1
jax: 0.10.0
libtpu: 0.0.40
codegen_flags: <defaults>
</compile_context>

<pallas_src>
import jax
import jax.numpy as jnp
from jax.experimental import pallas as pl
from jax.experimental.pallas import tpu as pltpu

HP = 32             # hidden features (20) padded to 32 sublanes (multiple of 8)
PW = 128            # packed lane width: [ w2 (out x in) | w1 b1 b2 w3 b3 | zero-pad ]
C_W1, C_B1, C_B2, C_W3, C_B3 = HP + 0, HP + 1, HP + 2, HP + 3, HP + 4
LANE = 128          # batch (lane) padding granularity


# ------------------------------ Pallas kernel ------------------------------- #
def _make_kernel(k):
    """One grid step == k Monte-Carlo weight samples == k forward() calls."""

    def kernel(x_ref, mu_ref, sigma_ref, eps_ref, out_ref):
        x = x_ref[...]                                  # (1, N): batch on the lane axis
        mu = mu_ref[...]                                # (HP, PW)
        sg = sigma_ref[...]                             # (HP, PW) softplus(rho), 0 in pad
        # fused reparameterization for all k samples of this step (padding stays 0)
        theta = mu + sg * eps_ref[...]                  # (k, HP, PW)

        ys = []
        for j in range(k):                              # static unroll, k is tiny
            th = theta[j]                               # (HP, PW)
            w2 = th[:, :HP]                             # (HP, HP) [out_feature, in_feature]
            w1 = th[:, C_W1:C_W1 + 1]                   # (HP, 1)  layer1.weight[:, 0]
            b1 = th[:, C_B1:C_B1 + 1]                   # (HP, 1)
            b2 = th[:, C_B2:C_B2 + 1]                   # (HP, 1)
            w3 = th[:, C_W3:C_W3 + 1]                   # (HP, 1)  output_layer.weight[0, :]
            b3 = th[0:1, C_B3:C_B3 + 1]                 # (1, 1)   output_layer.bias

            # layer1 (in_features == 1): K=1 contraction -> VPU outer product.
            h1 = jnp.maximum(w1 * x + b1, 0.0)                              # (HP, N)
            # layer2: the only real matmul, feature-major: h2 = W2 @ h1 (== F.linear).
            h2 = jnp.dot(w2, h1, preferred_element_type=jnp.float32)        # (HP, N)
            h2 = jnp.maximum(h2 + b2, 0.0)
            # output layer (out_features == 1): VPU multiply + sublane reduce.
            ys.append(jnp.sum(w3 * h2, axis=0, keepdims=True) + b3)         # (1, N)

        out_ref[...] = jnp.stack(ys, axis=0).astype(out_ref.dtype)          # (k, 1, N)

    return kernel


# --------------------------------- wrapper ----------------------------------- #
def bayesian_mlp_forward(x, mu_packed, sigma_packed, eps, *, samples_per_step=None):
    """Run eps.shape[0] forward passes of the BayesianMLP, each with weights
    theta = mu + sigma * eps sampled inside the kernel.  Returns (S, batch, 1)."""
    n = x.shape[0]
    s = eps.shape[0]
    assert mu_packed.shape == (HP, PW) and sigma_packed.shape == (HP, PW)
    assert eps.shape == (s, HP, PW)

    if samples_per_step is None:
        samples_per_step = next(c for c in (4, 2, 1) if s % c == 0)
    k = samples_per_step
    assert s % k == 0, "num_samples must be divisible by samples_per_step"

    n_pad = pl.cdiv(n, LANE) * LANE                      # lane-dense output tiles
    x_row = jnp.zeros((1, n_pad), jnp.float32).at[0, :n].set(
        x.reshape(n).astype(jnp.float32))                # feature-major: batch on lanes

    out = pl.pallas_call(
        _make_kernel(k),
        out_shape=jax.ShapeDtypeStruct((s, 1, n_pad), jnp.float32),
        grid_spec=pltpu.PrefetchScalarGridSpec(
            num_scalar_prefetch=0,
            grid=(s // k,),                              # k MC samples per step
            in_specs=[
                pl.BlockSpec((1, n_pad), lambda i: (0, 0)),      # x (shared)
                pl.BlockSpec((HP, PW), lambda i: (0, 0)),        # packed mu
                pl.BlockSpec((HP, PW), lambda i: (0, 0)),        # packed sigma
                pl.BlockSpec((k, HP, PW), lambda i: (i, 0, 0)),  # per-step eps slab
            ],
            out_specs=pl.BlockSpec((k, 1, n_pad), lambda i: (i, 0, 0)),
        ),
        compiler_params=pltpu.CompilerParams(
            dimension_semantics=("parallel",),           # independent steps -> both v7x TCs
        ),
        # TODO(synk): if batch grows beyond ~512, add a second (lane-tiled) grid axis
        # so h1/h2 stay within the 64-vreg file.
    )(x_row, mu_packed, sigma_packed, eps)

    return jnp.swapaxes(out[:, :, :n], 1, 2)             # (S, 1, N) -> (S, N, 1)


# ---------------------- parameter init / packing (host) --------------------- #
def init_packed_params(key, hidden_size, posterior_mu_init=0.0, posterior_rho_init=-3.0):
    """Mirror bayesian_torch LinearReparameterization init (mu ~ N(mu_init, 0.1),
    rho ~ N(rho_init, 0.1)) for all 3 layers, pack into one (HP, PW) mu tensor and one
    (HP, PW) sigma = softplus(rho) tensor with padded entries exactly zero."""
    h = hidden_size
    assert h <= HP
    ks = jax.random.split(key, 12)

    def draw(k, shape, loc):
        return loc + 0.1 * jax.random.normal(k, shape, jnp.float32)

    mu = dict(w1=draw(ks[0], (h,), posterior_mu_init), b1=draw(ks[1], (h,), posterior_mu_init),
              w2=draw(ks[2], (h, h), posterior_mu_init), b2=draw(ks[3], (h,), posterior_mu_init),
              w3=draw(ks[4], (h,), posterior_mu_init), b3=draw(ks[5], (1,), posterior_mu_init))
    rho = dict(w1=draw(ks[6], (h,), posterior_rho_init), b1=draw(ks[7], (h,), posterior_rho_init),
               w2=draw(ks[8], (h, h), posterior_rho_init), b2=draw(ks[9], (h,), posterior_rho_init),
               w3=draw(ks[10], (h,), posterior_rho_init), b3=draw(ks[11], (1,), posterior_rho_init))

    def pack(p):
        out = jnp.zeros((HP, PW), jnp.float32)
        out = out.at[:h, :h].set(p["w2"])                 # torch layout (out, in)
        out = out.at[:h, C_W1].set(p["w1"])
        out = out.at[:h, C_B1].set(p["b1"])
        out = out.at[:h, C_B2].set(p["b2"])
        out = out.at[:h, C_W3].set(p["w3"])
        out = out.at[0, C_B3].set(p["b3"][0])
        return out

    mu_packed = pack(mu)
    ones = {name: jnp.ones_like(v) for name, v in rho.items()}
    # hoisted, sample-invariant softplus; padding masked to exactly zero
    sigma_packed = jax.nn.softplus(pack(rho)) * pack(ones)
    return mu_packed, sigma_packed


# ----------------------------------- main ----------------------------------- #
if __name__ == "__main__":
    hidden_size = 20        # BayesianMLP default
    batch = 64              # small batch; wrapper pads to 128 lanes and slices back
    num_samples = 8         # Monte-Carlo weight samples (even -> both v7x TCs busy)

    key = jax.random.PRNGKey(0)
    k_x, k_p, k_e = jax.random.split(key, 3)
    x = jax.random.normal(k_x, (batch, 1), jnp.float32)           # (N, 1) regression inputs
    mu_packed, sigma_packed = init_packed_params(k_p, hidden_size)
    eps = jax.random.normal(k_e, (num_samples, HP, PW), jnp.float32)   # one RNG call for all S

    y = bayesian_mlp_forward(x, mu_packed, sigma_packed, eps)
    jax.block_until_ready(y)
    assert y.shape == (num_samples, batch, 1)
    assert bool(jnp.all(jnp.isfinite(y)))

    # pure-JAX reference replay on exactly the same (mu, sigma, eps)
    theta = mu_packed[None] + sigma_packed[None] * eps            # padding is exactly 0
    w2 = theta[:, :, :HP]
    w1, b1 = theta[:, :, C_W1], theta[:, :, C_B1]
    b2, w3 = theta[:, :, C_B2], theta[:, :, C_W3]
    b3 = theta[:, 0, C_B3]
    xv = x[:, 0]                                                  # (N,)
    h1 = jax.nn.relu(w1[:, :, None] * xv[None, None, :] + b1[:, :, None])   # (S,HP,N)
    h2 = jax.nn.relu(jnp.einsum("soi,sin->son", w2, h1) + b2[:, :, None])   # (S,HP,N)
    y_ref = jnp.sum(w3[:, :, None] * h2, axis=1) + b3[:, None]              # (S,N)
    err = float(jnp.max(jnp.abs(y[:, :, 0] - y_ref)))
    assert err < 1e-4, err

    # TODO(synk): kl_loss / elbo / get_normal_log_likelihood (and the log_sigma2
    # parameter) are training-time scalar losses, not part of forward(); not in-kernel.
    print("KERNEL_OK")
</pallas_src>

<mosaic_0001>
module attributes {stable_mosaic.version = 11 : i64} {
  func.func @kernel(%arg0: i32, %arg1: memref<1x128xf32, #tpu.memory_space<vmem>>, %arg2: memref<32x128xf32, #tpu.memory_space<vmem>>, %arg3: memref<32x128xf32, #tpu.memory_space<vmem>>, %arg4: memref<4x32x128xf32, #tpu.memory_space<vmem>>, %arg5: memref<4x1x128xf32, #tpu.memory_space<vmem>>) attributes {dimension_semantics = [#tpu.dimension_semantics<parallel>], iteration_bounds = array<i64: 2>, scalar_prefetch = 0 : i64, scratch_operands = 0 : i64, tpu.core_type = #tpu.core_type<tc>, window_params = [{pipeline_mode = #tpu.pipeline_mode<synchronous>, transform_indices = @transform_0, window_bounds = array<i64: 1, 128>}, {pipeline_mode = #tpu.pipeline_mode<synchronous>, transform_indices = @transform_1, window_bounds = array<i64: 32, 128>}, {pipeline_mode = #tpu.pipeline_mode<synchronous>, transform_indices = @transform_2, window_bounds = array<i64: 32, 128>}, {transform_indices = @transform_3, window_bounds = array<i64: 4, 32, 128>}, {transform_indices = @transform_4, window_bounds = array<i64: 4, 1, 128>}]} {
    %c0 = arith.constant 0 : index
    %c0_0 = arith.constant 0 : index
    %0 = vector.load %arg1[%c0, %c0_0] : memref<1x128xf32, #tpu.memory_space<vmem>>, vector<1x128xf32>
    %c0_1 = arith.constant 0 : index
    %c0_2 = arith.constant 0 : index
    %1 = vector.load %arg2[%c0_1, %c0_2] : memref<32x128xf32, #tpu.memory_space<vmem>>, vector<32x128xf32>
    %c0_3 = arith.constant 0 : index
    %c0_4 = arith.constant 0 : index
    %2 = vector.load %arg3[%c0_3, %c0_4] : memref<32x128xf32, #tpu.memory_space<vmem>>, vector<32x128xf32>
    %c0_5 = arith.constant 0 : index
    %c0_6 = arith.constant 0 : index
    %c0_7 = arith.constant 0 : index
    %3 = vector.load %arg4[%c0_5, %c0_6, %c0_7] : memref<4x32x128xf32, #tpu.memory_space<vmem>>, vector<4x32x128xf32>
    %4 = vector.shape_cast %2 : vector<32x128xf32> to vector<1x32x128xf32>
    %5 = vector.broadcast %4 : vector<1x32x128xf32> to vector<4x32x128xf32>
    %6 = arith.mulf %5, %3 : vector<4x32x128xf32>
    %7 = vector.shape_cast %1 : vector<32x128xf32> to vector<1x32x128xf32>
    %8 = vector.broadcast %7 : vector<1x32x128xf32> to vector<4x32x128xf32>
    %9 = arith.addf %8, %6 : vector<4x32x128xf32>
    %10 = vector.extract_strided_slice %9 {offsets = [0, 0, 0], sizes = [1, 32, 128], strides = [1, 1, 1]} : vector<4x32x128xf32> to vector<1x32x128xf32>
    %11 = vector.shape_cast %10 : vector<1x32x128xf32> to vector<32x128xf32>
    %12 = vector.extract_strided_slice %11 {offsets = [0, 0], sizes = [32, 32], strides = [1, 1]} : vector<32x128xf32> to vector<32x32xf32>
    %13 = vector.extract_strided_slice %11 {offsets = [0, 32], sizes = [32, 1], strides = [1, 1]} : vector<32x128xf32> to vector<32x1xf32>
    %14 = vector.extract_strided_slice %11 {offsets = [0, 33], sizes = [32, 1], strides = [1, 1]} : vector<32x128xf32> to vector<32x1xf32>
    %15 = vector.extract_strided_slice %11 {offsets = [0, 34], sizes = [32, 1], strides = [1, 1]} : vector<32x128xf32> to vector<32x1xf32>
    %16 = vector.extract_strided_slice %11 {offsets = [0, 35], sizes = [32, 1], strides = [1, 1]} : vector<32x128xf32> to vector<32x1xf32>
    %17 = vector.extract_strided_slice %11 {offsets = [0, 36], sizes = [1, 1], strides = [1, 1]} : vector<32x128xf32> to vector<1x1xf32>
    %18 = vector.broadcast %13 : vector<32x1xf32> to vector<32x128xf32>
    %19 = vector.broadcast %0 : vector<1x128xf32> to vector<32x128xf32>
    %20 = arith.mulf %18, %19 : vector<32x128xf32>
    %21 = vector.broadcast %14 : vector<32x1xf32> to vector<32x128xf32>
    %22 = arith.addf %20, %21 : vector<32x128xf32>
    %cst = arith.constant 0.000000e+00 : f32
    %23 = vector.broadcast %cst : f32 to vector<32x128xf32>
    %24 = arith.maximumf %22, %23 : vector<32x128xf32>
    %cst_8 = arith.constant dense<0.000000e+00> : vector<32x128xf32>
    %25 = tpu.matmul %12, %24, %cst_8 {dimension_numbers = #tpu.dot_dimension_numbers<[1], [0], [0], [1], [0, 0, 1, 1], [], []>} : vector<32x32xf32>, vector<32x128xf32>, vector<32x128xf32> -> vector<32x128xf32>
    %26 = vector.broadcast %15 : vector<32x1xf32> to vector<32x128xf32>
    %27 = arith.addf %25, %26 : vector<32x128xf32>
    %cst_9 = arith.constant 0.000000e+00 : f32
    %28 = vector.broadcast %cst_9 : f32 to vector<32x128xf32>
    %29 = arith.maximumf %27, %28 : vector<32x128xf32>
    %30 = vector.broadcast %16 : vector<32x1xf32> to vector<32x128xf32>
    %31 = arith.mulf %30, %29 : vector<32x128xf32>
    %cst_10 = arith.constant dense<0.000000e+00> : vector<128xf32>
    %32 = vector.multi_reduction <add>, %31, %cst_10 [0] : vector<32x128xf32> to vector<128xf32>
    %33 = vector.shape_cast %32 : vector<128xf32> to vector<1x128xf32>
    %34 = vector.broadcast %17 : vector<1x1xf32> to vector<1x128xf32>
    %35 = arith.addf %33, %34 : vector<1x128xf32>
    %36 = vector.extract_strided_slice %9 {offsets = [1, 0, 0], sizes = [1, 32, 128], strides = [1, 1, 1]} : vector<4x32x128xf32> to vector<1x32x128xf32>
    %37 = vector.shape_cast %36 : vector<1x32x128xf32> to vector<32x128xf32>
    %38 = vector.extract_strided_slice %37 {offsets = [0, 0], sizes = [32, 32], strides = [1, 1]} : vector<32x128xf32> to vector<32x32xf32>
    %39 = vector.extract_strided_slice %37 {offsets = [0, 32], sizes = [32, 1], strides = [1, 1]} : vector<32x128xf32> to vector<32x1xf32>
    %40 = vector.extract_strided_slice %37 {offsets = [0, 33], sizes = [32, 1], strides = [1, 1]} : vector<32x128xf32> to vector<32x1xf32>
    %41 = vector.extract_strided_slice %37 {offsets = [0, 34], sizes = [32, 1], strides = [1, 1]} : vector<32x128xf32> to vector<32x1xf32>
    %42 = vector.extract_strided_slice %37 {offsets = [0, 35], sizes = [32, 1], strides = [1, 1]} : vector<32x128xf32> to vector<32x1xf32>
    %43 = vector.extract_strided_slice %37 {offsets = [0, 36], sizes = [1, 1], strides = [1, 1]} : vector<32x128xf32> to vector<1x1xf32>
    %44 = vector.broadcast %39 : vector<32x1xf32> to vector<32x128xf32>
    %45 = vector.broadcast %0 : vector<1x128xf32> to vector<32x128xf32>
    %46 = arith.mulf %44, %45 : vector<32x128xf32>
    %47 = vector.broadcast %40 : vector<32x1xf32> to vector<32x128xf32>
    %48 = arith.addf %46, %47 : vector<32x128xf32>
    %cst_11 = arith.constant 0.000000e+00 : f32
    %49 = vector.broadcast %cst_11 : f32 to vector<32x128xf32>
    %50 = arith.maximumf %48, %49 : vector<32x128xf32>
    %cst_12 = arith.constant dense<0.000000e+00> : vector<32x128xf32>
    %51 = tpu.matmul %38, %50, %cst_12 {dimension_numbers = #tpu.dot_dimension_numbers<[1], [0], [0], [1], [0, 0, 1, 1], [], []>} : vector<32x32xf32>, vector<32x128xf32>, vector<32x128xf32> -> vector<32x128xf32>
    %52 = vector.broadcast %41 : vector<32x1xf32> to vector<32x128xf32>
    %53 = arith.addf %51, %52 : vector<32x128xf32>
    %cst_13 = arith.constant 0.000000e+00 : f32
    %54 = vector.broadcast %cst_13 : f32 to vector<32x128xf32>
    %55 = arith.maximumf %53, %54 : vector<32x128xf32>
    %56 = vector.broadcast %42 : vector<32x1xf32> to vector<32x128xf32>
    %57 = arith.mulf %56, %55 : vector<32x128xf32>
    %cst_14 = arith.constant dense<0.000000e+00> : vector<128xf32>
    %58 = vector.multi_reduction <add>, %57, %cst_14 [0] : vector<32x128xf32> to vector<128xf32>
    %59 = vector.shape_cast %58 : vector<128xf32> to vector<1x128xf32>
    %60 = vector.broadcast %43 : vector<1x1xf32> to vector<1x128xf32>
    %61 = arith.addf %59, %60 : vector<1x128xf32>
    %62 = vector.extract_strided_slice %9 {offsets = [2, 0, 0], sizes = [1, 32, 128], strides = [1, 1, 1]} : vector<4x32x128xf32> to vector<1x32x128xf32>
    %63 = vector.shape_cast %62 : vector<1x32x128xf32> to vector<32x128xf32>
    %64 = vector.extract_strided_slice %63 {offsets = [0, 0], sizes = [32, 32], strides = [1, 1]} : vector<32x128xf32> to vector<32x32xf32>
    %65 = vector.extract_strided_slice %63 {offsets = [0, 32], sizes = [32, 1], strides = [1, 1]} : vector<32x128xf32> to vector<32x1xf32>
    %66 = vector.extract_strided_slice %63 {offsets = [0, 33], sizes = [32, 1], strides = [1, 1]} : vector<32x128xf32> to vector<32x1xf32>
    %67 = vector.extract_strided_slice %63 {offsets = [0, 34], sizes = [32, 1], strides = [1, 1]} : vector<32x128xf32> to vector<32x1xf32>
    %68 = vector.extract_strided_slice %63 {offsets = [0, 35], sizes = [32, 1], strides = [1, 1]} : vector<32x128xf32> to vector<32x1xf32>
    %69 = vector.extract_strided_slice %63 {offsets = [0, 36], sizes = [1, 1], strides = [1, 1]} : vector<32x128xf32> to vector<1x1xf32>
    %70 = vector.broadcast %65 : vector<32x1xf32> to vector<32x128xf32>
    %71 = vector.broadcast %0 : vector<1x128xf32> to vector<32x128xf32>
    %72 = arith.mulf %70, %71 : vector<32x128xf32>
    %73 = vector.broadcast %66 : vector<32x1xf32> to vector<32x128xf32>
    %74 = arith.addf %72, %73 : vector<32x128xf32>
    %cst_15 = arith.constant 0.000000e+00 : f32
    %75 = vector.broadcast %cst_15 : f32 to vector<32x128xf32>
    %76 = arith.maximumf %74, %75 : vector<32x128xf32>
    %cst_16 = arith.constant dense<0.000000e+00> : vector<32x128xf32>
    %77 = tpu.matmul %64, %76, %cst_16 {dimension_numbers = #tpu.dot_dimension_numbers<[1], [0], [0], [1], [0, 0, 1, 1], [], []>} : vector<32x32xf32>, vector<32x128xf32>, vector<32x128xf32> -> vector<32x128xf32>
    %78 = vector.broadcast %67 : vector<32x1xf32> to vector<32x128xf32>
    %79 = arith.addf %77, %78 : vector<32x128xf32>
    %cst_17 = arith.constant 0.000000e+00 : f32
    %80 = vector.broadcast %cst_17 : f32 to vector<32x128xf32>
    %81 = arith.maximumf %79, %80 : vector<32x128xf32>
    %82 = vector.broadcast %68 : vector<32x1xf32> to vector<32x128xf32>
    %83 = arith.mulf %82, %81 : vector<32x128xf32>
    %cst_18 = arith.constant dense<0.000000e+00> : vector<128xf32>
    %84 = vector.multi_reduction <add>, %83, %cst_18 [0] : vector<32x128xf32> to vector<128xf32>
    %85 = vector.shape_cast %84 : vector<128xf32> to vector<1x128xf32>
    %86 = vector.broadcast %69 : vector<1x1xf32> to vector<1x128xf32>
    %87 = arith.addf %85, %86 : vector<1x128xf32>
    %88 = vector.extract_strided_slice %9 {offsets = [3, 0, 0], sizes = [1, 32, 128], strides = [1, 1, 1]} : vector<4x32x128xf32> to vector<1x32x128xf32>
    %89 = vector.shape_cast %88 : vector<1x32x128xf32> to vector<32x128xf32>
    %90 = vector.extract_strided_slice %89 {offsets = [0, 0], sizes = [32, 32], strides = [1, 1]} : vector<32x128xf32> to vector<32x32xf32>
    %91 = vector.extract_strided_slice %89 {offsets = [0, 32], sizes = [32, 1], strides = [1, 1]} : vector<32x128xf32> to vector<32x1xf32>
    %92 = vector.extract_strided_slice %89 {offsets = [0, 33], sizes = [32, 1], strides = [1, 1]} : vector<32x128xf32> to vector<32x1xf32>
    %93 = vector.extract_strided_slice %89 {offsets = [0, 34], sizes = [32, 1], strides = [1, 1]} : vector<32x128xf32> to vector<32x1xf32>
    %94 = vector.extract_strided_slice %89 {offsets = [0, 35], sizes = [32, 1], strides = [1, 1]} : vector<32x128xf32> to vector<32x1xf32>
    %95 = vector.extract_strided_slice %89 {offsets = [0, 36], sizes = [1, 1], strides = [1, 1]} : vector<32x128xf32> to vector<1x1xf32>
    %96 = vector.broadcast %91 : vector<32x1xf32> to vector<32x128xf32>
    %97 = vector.broadcast %0 : vector<1x128xf32> to vector<32x128xf32>
    %98 = arith.mulf %96, %97 : vector<32x128xf32>
    %99 = vector.broadcast %92 : vector<32x1xf32> to vector<32x128xf32>
    %100 = arith.addf %98, %99 : vector<32x128xf32>
    %cst_19 = arith.constant 0.000000e+00 : f32
    %101 = vector.broadcast %cst_19 : f32 to vector<32x128xf32>
    %102 = arith.maximumf %100, %101 : vector<32x128xf32>
    %cst_20 = arith.constant dense<0.000000e+00> : vector<32x128xf32>
    %103 = tpu.matmul %90, %102, %cst_20 {dimension_numbers = #tpu.dot_dimension_numbers<[1], [0], [0], [1], [0, 0, 1, 1], [], []>} : vector<32x32xf32>, vector<32x128xf32>, vector<32x128xf32> -> vector<32x128xf32>
    %104 = vector.broadcast %93 : vector<32x1xf32> to vector<32x128xf32>
    %105 = arith.addf %103, %104 : vector<32x128xf32>
    %cst_21 = arith.constant 0.000000e+00 : f32
    %106 = vector.broadcast %cst_21 : f32 to vector<32x128xf32>
    %107 = arith.maximumf %105, %106 : vector<32x128xf32>
    %108 = vector.broadcast %94 : vector<32x1xf32> to vector<32x128xf32>
    %109 = arith.mulf %108, %107 : vector<32x128xf32>
    %cst_22 = arith.constant dense<0.000000e+00> : vector<128xf32>
    %110 = vector.multi_reduction <add>, %109, %cst_22 [0] : vector<32x128xf32> to vector<128xf32>
    %111 = vector.shape_cast %110 : vector<128xf32> to vector<1x128xf32>
    %112 = vector.broadcast %95 : vector<1x1xf32> to vector<1x128xf32>
    %113 = arith.addf %111, %112 : vector<1x128xf32>
    %114 = vector.shape_cast %35 : vector<1x128xf32> to vector<1x1x128xf32>
    %115 = vector.shape_cast %61 : vector<1x128xf32> to vector<1x1x128xf32>
    %116 = vector.shape_cast %87 : vector<1x128xf32> to vector<1x1x128xf32>
    %117 = vector.shape_cast %113 : vector<1x128xf32> to vector<1x1x128xf32>
    %118 = tpu.concatenate %114, %115, %116, %117 in 0 : vector<1x1x128xf32>, vector<1x1x128xf32>, vector<1x1x128xf32>, vector<1x1x128xf32> -> vector<4x1x128xf32>
    %c0_23 = arith.constant 0 : index
    %c0_24 = arith.constant 0 : index
    %c0_25 = arith.constant 0 : index
    %119 = vector.load %arg5[%c0_23, %c0_24, %c0_25] : memref<4x1x128xf32, #tpu.memory_space<vmem>>, vector<4x1x128xf32>
    tpu.vector_store %arg5[%c0_23, %c0_24, %c0_25], %118 {strides = array<i32>} : memref<4x1x128xf32, #tpu.memory_space<vmem>>, vector<4x1x128xf32>,
    return
  }
  func.func @transform_0(%arg0: i32) -> (i32, i32) {
    %c0_i32 = arith.constant 0 : i32
    %c0_i32_0 = arith.constant 0 : i32
    %c0_i32_1 = arith.constant 0 : i32
    return %c0_i32, %c0_i32_0 : i32, i32
  }
  func.func @transform_1(%arg0: i32) -> (i32, i32) {
    %c0_i32 = arith.constant 0 : i32
    %c0_i32_0 = arith.constant 0 : i32
    %c0_i32_1 = arith.constant 0 : i32
    return %c0_i32, %c0_i32_0 : i32, i32
  }
  func.func @transform_2(%arg0: i32) -> (i32, i32) {
    %c0_i32 = arith.constant 0 : i32
    %c0_i32_0 = arith.constant 0 : i32
    %c0_i32_1 = arith.constant 0 : i32
    return %c0_i32, %c0_i32_0 : i32, i32
  }
  func.func @transform_3(%arg0: i32) -> (i32, i32, i32) {
    %c0_i32 = arith.constant 0 : i32
    %c0_i32_0 = arith.constant 0 : i32
    %c0_i32_1 = arith.constant 0 : i32
    return %arg0, %c0_i32, %c0_i32_0 : i32, i32, i32
  }
  func.func @transform_4(%arg0: i32) -> (i32, i32, i32) {
    %c0_i32 = arith.constant 0 : i32
    %c0_i32_0 = arith.constant 0 : i32
    %c0_i32_1 = arith.constant 0 : i32
    return %arg0, %c0_i32, %c0_i32_0 : i32, i32, i32
  }
}

</mosaic_0001>

<bundles_post_ra>
// kernel: tpu_custom_call.1
= control target key start
LH: loop header
LB: loop body
LE: loop exit
PB: predicated region body
PF: predicated region fallthrough
CT: control target
= control target key end

     0   :  { %9 = vsyncpa [#allocation3], 0  ;;  %s2268_s0 = inlined_call_operand.hbm [shape: f32[1,128], index: 0, kind: input, shape index: {}]   ;;  %s2269_s1 = inlined_call_operand.hbm [shape: f32[32,128], index: 1, kind: input, shape index: {}]   ;;  %s2270_s2 = inlined_call_operand.hbm [shape: f32[32,128], index: 2, kind: input, shape index: {}]   ;;  %s2271_s3 = inlined_call_operand.hbm [shape: f32[8,32,128], index: 3, kind: input, shape index: {}]   ;;  %s2272_s4 = inlined_call_operand.hbm [shape: f32[8,1,128], index: 4, kind: output, shape index: {}]  }
   0x1   :  { %10 = vsyncpa [#allocation6], 0 }
   0x2   :  { %11 = vsyncpa [#allocation9], 0 }
   0x3   :  { %13 = vsyncpa [#allocation9 + $0x1], 0 }
   0x4   :  { %14 = vsyncpa [#allocation4], 0 }
   0x5   :  { %16 = vsyncpa [#allocation4 + $0x1], 0  ;;  %s1726_s15 = smov 0   ;;  %s1728_s16 = smov 0  }
   0x6   :  { %s1730_s17 = smov 0   ;;  %s1732_s18 = smov 0  }
   0x7 LB: > { %s1747_s19 = sadd.s32 4294967295, %s1685_s18   ;;  %s1227_s20 = sadd.s32 4294967294, %s1685_s18   ;;  %s1685_s18 = sphi %s1732_s18, %s2295_s18   ;;  %s1681_s17 = sphi %s1730_s17, %s2294_s17   ;;  %s1677_s16 = sphi %s1728_s16, %s2293_s16   ;;  %s1673_s15 = sphi %s1726_s15, %s2292_s15  }
   0x8   : > { %p105_p0 = scmp.ne.s32.totalorder %s1677_s16, %s1673_s15  ;;  %p2273_p1 = scmp.eq.s32.totalorder %s1747_s19, 0 }
   0x9   : > { %p135_p3 = scmp.eq.s32.totalorder %s1227_s20, 1  ;;  %p1228_p5 = scmp.ge.s32.totalorder %s1685_s18, 1 }
   0xa   : > { %p1756_p4 = por %p2273_p1, %p105_p0  ;;  %p142_p7 = scmp.lt.s32.totalorder %s1685_s18, 3 }
   0xb   : > { %p1761_p6 = por %p135_p3, %p105_p0  ;;  %s1687_s24 = smov [#allocation5]  }
   0xc   : > { %s2276_s21 = scalar_select %p1756_p4, 1, 0 }
   0xd   : > { %s2277_s22 = scalar_select %p1761_p6, 1, 0 }
   0xe   : > { %p1766_p8 = pnand %p1228_p5, %p142_p7  ;;  %s165_s25 = sshll.u32 %s1687_s24, 4  ;;  %s1770_s25 = int_to_ptr.vmem [resolvable:$true] %s165_s25 }
   0xf   : > { %s1688_s27 = smov [#allocation2]   ;;  %s1689_s29 = smov [#allocation7]  }
  0x10   : > { %s2278_s23 = scalar_select %p1766_p8, 1, 0 }
  0x11   : > { %p1404_p9 = pneg %p1766_p8  ;;  %s155_s28 = sshll.u32 %s1688_s27, 4  ;;  %s1781_s28 = int_to_ptr.vmem [resolvable:$true] %s155_s28 }
  0x12   : > { %s1783_s30 = sshll.u32 %s1689_s29, 4  ;;  %s1497_s7 = scalar_lea.hbm %s2269_s1, 512  ;;  %s179_s30 = int_to_ptr.vmem [resolvable:$true] %s1783_s30 }
  0x13   : > { %p1777_p11 = pnand %p1404_p9, %p2273_p1  ;;  %p1498_p12 = scmp.ne.s32.totalorder %s2269_s1, %s1497_s7 }
  0x14   : > { %p1504_p5 = scmp.lt.u32.totalorder %s1497_s7, %s2269_s1 }
  0x15   : > { %p1793_p13 = pneg %p1777_p11 }
  0x17   : > { %p1500_p0 = pnand %p1793_p13, %p1498_p12 }
  0x19   : > { %p1501_p3 = pneg %p1500_p0 }
  0x1b   : > { %p1506_p7 = pnand %p1504_p5, %p1501_p3 }
  0x1d   : > { %1509 = shalt.err (!%p1506_p7)
}
  0x1e   : > { %s1510_s13 = scalar_lea.vmem %s1770_s25, 512  ;;  %p1518_p2 = scmp.lt.s32.totalorder %s1770_s25, %s1770_s25 }
  0x1f   : > { %p1511_p9 = scmp.ne.s32.totalorder %s1770_s25, %s1510_s13  ;;  %p1519_p6 = scmp.lt.s32.totalorder %s1510_s13, %s1510_s13 }
  0x21   : > { %p1513_p10 = pnand %p1511_p9, %p1793_p13  ;;  %p1520_p12 = por %p1519_p6, %p1518_p2 }
  0x23   : > { %p1514_p1 = pneg %p1513_p10 }
  0x25   : > { %p1521_p0 = pnand %p1520_p12, %p1514_p1 }
  0x27   : > { %1524 = shalt.err (!%p1521_p0)
}
  0x28   : > { %s1690_s14 = smov 128   ;;  %s1691_s20 = smov 8  }
  0x29   : > { %1410 = dma.hbm_to_vmem [thread:$0]  (!%p1777_p11), %s2269_s1, 512, %s1770_s25, [#allocation6], %s1690_s14, %s1690_s14, %s1691_s20  }
  0x2a   : > { %s1525_s6 = scalar_lea.hbm %s2268_s0, 16 }
  0x2b   : > { %p1526_p1 = scmp.ne.s32.totalorder %s2268_s0, %s1525_s6  ;;  %p1532_p10 = scmp.lt.u32.totalorder %s1525_s6, %s2268_s0 }
  0x2d   : > { %p1528_p2 = pnand %p1526_p1, %p1793_p13 }
  0x2f   : > { %p1529_p6 = pneg %p1528_p2 }
  0x31   : > { %p1534_p3 = pnand %p1532_p10, %p1529_p6 }
  0x33   : > { %1537 = shalt.err (!%p1534_p3)
}
  0x34   : > { %s1538_s25 = scalar_lea.vmem %s1781_s28, 16  ;;  %s1545_s12 = scalar_lea.vmem %s1781_s28, 32 }
  0x35   : > { %p1539_p5 = scmp.ne.s32.totalorder %s1781_s28, %s1538_s25  ;;  %p1546_p12 = scmp.lt.s32.totalorder %s1781_s28, %s1781_s28 }
  0x36   : > { %p1547_p0 = scmp.lt.s32.totalorder %s1545_s12, %s1538_s25 }
  0x37   : > { %p1541_p7 = pnand %p1539_p5, %p1793_p13 }
  0x38   : > { %p1548_p1 = por %p1547_p0, %p1546_p12 }
  0x39   : > { %p1542_p9 = pneg %p1541_p7 }
  0x3b   : > { %p1549_p2 = pnand %p1548_p1, %p1542_p9 }
  0x3d   : > { %1552 = shalt.err (!%p1549_p2)
}
  0x3e   : > { %1407 = dma.hbm_to_vmem [thread:$0]  (!%p1777_p11), %s2268_s0, 16, %s1781_s28, [#allocation3]  }
  0x3f   : > { %s1553_s5 = scalar_lea.hbm %s2270_s2, 512 }
  0x40   : > { %p1554_p6 = scmp.ne.s32.totalorder %s2270_s2, %s1553_s5  ;;  %p1560_p5 = scmp.lt.u32.totalorder %s1553_s5, %s2270_s2 }
  0x42   : > { %p1556_p10 = pnand %p1554_p6, %p1793_p13 }
  0x44   : > { %p1557_p3 = pneg %p1556_p10 }
  0x46   : > { %p1562_p7 = pnand %p1560_p5, %p1557_p3 }
  0x48   : > { %1565 = shalt.err (!%p1562_p7)
}
  0x49   : > { %s1566_s11 = scalar_lea.vmem %s179_s30, 512  ;;  %p1574_p1 = scmp.lt.s32.totalorder %s179_s30, %s179_s30 }
  0x4a   : > { %p1567_p9 = scmp.ne.s32.totalorder %s179_s30, %s1566_s11  ;;  %p1575_p2 = scmp.lt.s32.totalorder %s1566_s11, %s1566_s11 }
  0x4c   : > { %p1569_p12 = pnand %p1567_p9, %p1793_p13  ;;  %p1576_p4 = por %p1575_p2, %p1574_p1 }
  0x4e   : > { %p1570_p0 = pneg %p1569_p12 }
  0x50   : > { %p1577_p8 = pnand %p1576_p4, %p1570_p0 }
  0x52   : > { %1580 = shalt.err (!%p1577_p8)
}
  0x53   : > { %1413 = dma.hbm_to_vmem [thread:$0]  (!%p1777_p11), %s2270_s2, 512, %s179_s30, [#allocation6], %s1690_s14, %s1690_s14, %s1691_s20  }
  0x54   : > { %s1864_s10 = sadd.s32 1, %s1685_s18   ;;  %s92_s12 = sadd.s32 1, %s1681_s17 }
  0x55   : > { %s89_s26 = ssub.s32 %s1685_s18, %s1864_s10  ;;  %p99_p8 = scmp.ne.s32.totalorder %s1681_s17, %s1677_s16 }
  0x56   : > { %p90_p4 = scmp.eq.s32.totalorder %s89_s26, 0  ;;  %p100_p13 = scmp.eq.s32.totalorder %s1685_s18, 0 }
  0x57   : > { %p1425_p6 = scmp.lt.s32.totalorder %s1685_s18, 2  ;;  %p2281_p3 = scmp.eq.s32.totalorder %s1747_s19, 1 }
  0x58   : > { %s1874_s13 = scalar_select %p90_p4, %s1681_s17, %s92_s12  }
  0x59   : > { %p101_p10 = por %p100_p13, %p99_p8  ;;  %p1878_p5 = por %p2281_p3, %p99_p8 }
  0x5a   : > { %s192_s27 = sand.u32 1, %s1681_s17   ;;  %s1266_s29 = sshll.u32 %s1685_s18, 11 }
  0x5b   : > { %s1233_s30 = sshll.u32 %s192_s27, 7  ;;  %s1887_s7 = scalar_lea.hbm %s2271_s3, %s1266_s29 }
  0x5c   : > { %s196_s8 = scalar_lea.vmem [#allocation8], %s1233_s30  ;;  %p1889_p11 = pnand %p1425_p6, %p101_p10 }
  0x5d   : > { %s204_s9 = sshll.u32 %s196_s8, 4  ;;  %s1895_s28 = scalar_lea.sflag [#allocation9], %s192_s27  ;;  %s1893_s9 = int_to_ptr.vmem [resolvable:$true] %s204_s9 }
  0x5e   : > { %s1581_s25 = scalar_lea.hbm %s1887_s7, 2048  ;;  %p1583_p9 = pneg %p1889_p11 }
  0x5f   : > { %p1582_p7 = scmp.ne.s32.totalorder %s1887_s7, %s1581_s25  ;;  %s1586_s29 = scalar_lea.hbm %s2271_s3, 4096 }
  0x60   : > { %p1587_p1 = scmp.lt.u32.totalorder %s1887_s7, %s2271_s3  ;;  %p1588_p2 = scmp.lt.u32.totalorder %s1586_s29, %s1581_s25 }
  0x61   : > { %p1584_p12 = pnand %p1583_p9, %p1582_p7  ;;  %p1590_p8 = scmp.lt.u32.totalorder %s1581_s25, %s1887_s7 }
  0x62   : > { %p1589_p4 = por %p1588_p2, %p1587_p1 }
  0x63   : > { %p1585_p0 = pneg %p1584_p12 }
  0x64   : > { %p1591_p13 = por %p1590_p8, %p1589_p4 }
  0x66   : > { %p1592_p6 = pnand %p1591_p13, %p1585_p0 }
  0x68   : > { %1595 = shalt.err (!%p1592_p6)
}
  0x69   : > { %s1596_s27 = scalar_lea.vmem %s1893_s9, 2048  ;;  %s1692_s6 = smov [#allocation8]  }
  0x6a   : > { %p1597_p10 = scmp.ne.s32.totalorder %s1893_s9, %s1596_s27  ;;  %s1601_s8 = sshll.u32 %s1692_s6, 4  ;;  %s1602_s8 = int_to_ptr.vmem [resolvable:$false] %s1601_s8 }
  0x6b   : > { %s1603_s26 = scalar_lea.vmem %s1602_s8, 4096  ;;  %p1604_p12 = scmp.lt.s32.totalorder %s1893_s9, %s1602_s8 }
  0x6c   : > { %p1599_p3 = pnand %p1597_p10, %p1583_p9  ;;  %p1605_p1 = scmp.lt.s32.totalorder %s1603_s26, %s1596_s27 }
  0x6e   : > { %p1600_p7 = pneg %p1599_p3  ;;  %p1606_p2 = por %p1605_p1, %p1604_p12 }
  0x70   : > { %p1607_p4 = pnand %p1606_p2, %p1600_p7 }
  0x72   : > { %1610 = shalt.err (!%p1607_p4)
}
  0x73   : > { %1417 = dma.hbm_to_vmem [thread:$0]  (!%p1889_p11), %s1887_s7, 2048, %s1893_s9, %s1895_s28, %s1690_s14, %s1690_s14, %s1691_s20  }
  0x74   : > { %p2284_p9 = scmp.ne.s32.totalorder %s2278_s23, 0 }
  0x75   : > { %p2285_p0 = scmp.eq.s32.totalorder (!%p2284_p9), %s1747_s19, 0 }
  0x76   : > { %216 = sbr.rel (%p2284_p9) target bundleno = 613 (0x265), region = 36 }
  0x7d   : > { %1656 = dma.done.wait (%p2285_p0), [#allocation3], 16   ;;  %p2286_p8 = pmov %p2285_p0 }
  0x7e   : > { %p2287_p13 = pmov %p2285_p0 }
  0x7f   : > { %1658 = vsyncadd (%p2286_p8), [#allocation3], 4294967280 }
  0x80   : > { %1660 = dma.done.wait (%p2287_p13), [#allocation6], 1024   ;;  %p2288_p6 = pmov %p2285_p0 }
  0x81   : > { %s1937_s11 = sand.u32 1, %s1677_s16   ;;  %p2289_p11 = scmp.ne.s32.totalorder %s2276_s21, 0 }
  0x82   : > { %1662 = vsyncadd (%p2288_p6), [#allocation6], 4294966272  ;;  %s1241_s23 = sshll.u32 %s1937_s11, 7  ;;  %s231_s14 = scalar_lea.sflag [#allocation9], %s1937_s11 }
  0x83   : > { %s1941_s20 = scalar_lea.vmem [#allocation8], %s1241_s23 }
  0x84   : > { %1664 = dma.done.wait (%p2289_p11), %s231_s14, 2048  }
  0x85   : > { %1666 = vsyncadd (%p2289_p11), %s231_s14, 4294965248  ;;  %v1693_v0 = vmov 32   ;;  %v1949_v1 = vld [vmem:[#allocation5] sm:$0xff]  ;;  %v267_v6 = vld [vmem:[#allocation7 + $0x8] sm:$0xff]  ;;  %v1694_v27 = vmov 33   ;;  %vm388_vm0 = vcmask 261120  }
  0x86   : > { %1475 = vset.pattern.permute.xlu1 %v1693_v0  ;;  %1474 = vset.pattern.permute.xlu0 %v1693_v0  ;;  %v1951_v2 = vld [vmem:[#allocation7] sm:$0xff]  ;;  %v1957_v8 = vld [vmem:[#allocation5 + $0x8] sm:$0xff]  ;;  %v1964_v14 = vld [vmem:[#allocation7 + $0x18] sm:$0xff]  ;;  %v1695_v57 = vmov 34   ;;  %v1696_v59 = vmov 35   ;;  %v1697_v60 = vmov 36  }
  0x87   : > { %v274_v3 = vld [vmem:[%s1941_s20 + $0x20] sm:$0xff]  ;;  %v275_v9 = vld [vmem:[%s1941_s20 + $0x28] sm:$0xff]  ;;  %v273_v15 = vld [vmem:[%s1941_s20 + $0x18] sm:$0xff]  ;;  %s1242_s21 = sshll.u32 %s1937_s11, 2  ;;  %s1267_s28 = sshll.u32 %s1747_s19, 6 }
  0x88   : > { %v290_v4 = vmul.f32 %v274_v3, %v1951_v2  ;;  %v270_v5 = vld [vmem:[%s1941_s20] sm:$0xff]  ;;  %v271_v10 = vld [vmem:[%s1941_s20 + $0x8] sm:$0xff]  ;;  %v291_v12 = vmul.f32 %v275_v9, %v267_v6  ;;  %v289_v19 = vmul.f32 %v273_v15, %v1964_v14  ;;  %v1979_v20 = vld [vmem:[#allocation5 + $0x18] sm:$0xff]  ;;  %s2198_s7 = scalar_lea.vmem [#allocation10], %s1242_s21  ;;  %s2223_s29 = scalar_lea.hbm %s2272_s4, %s1267_s28 }
  0x89   : > { %v286_v7 = vmul.f32 %v270_v5, %v1951_v2  ;;  %v287_v13 = vmul.f32 %v271_v10, %v267_v6  ;;  %v279_v21 = vld [vmem:[%s1941_s20 + $0x48] sm:$0xff]  ;;  %v281_v24 = vld [vmem:[%s1941_s20 + $0x58] sm:$0xff]  ;;  %v1988_v25 = vld [vmem:[#allocation7 + $0x10] sm:$0xff]  ;;  %s1123_s9 = sshll.u32 %s2198_s7, 4  ;;  %s1110_s30 = scalar_lea.sflag [#allocation4], %s1937_s11  ;;  %s2217_s9 = int_to_ptr.vmem [resolvable:$true] %s1123_s9 }
  0x8a   : > { %v1962_v11 = vadd.f32 %v290_v4, %v1949_v1  ;;  %v1972_v17 = vadd.f32 %v291_v12, %v1957_v8  ;;  %v1985_v22 = vadd.f32 %v289_v19, %v1979_v20  ;;  %v295_v23 = vmul.f32 %v279_v21, %v267_v6  ;;  %v272_v26 = vld [vmem:[%s1941_s20 + $0x10] sm:$0xff]  ;;  %v277_v36 = vld [vmem:[%s1941_s20 + $0x38] sm:$0xff]  ;;  %v278_v40 = vld [vmem:[%s1941_s20 + $0x40] sm:$0xff]  ;;  %s1611_s5 = scalar_lea.vmem %s2217_s9, 64  ;;  %s1698_s19 = smov [#allocation10]  }
  0x8b   : > { %v1968_v16 = vadd.f32 %v286_v7, %v1949_v1  ;;  %v1976_v18 = vadd.f32 %v287_v13, %v1957_v8  ;;  %v297_v29 = vmul.f32 %v281_v24, %v1964_v14  ;;  %v288_v30 = vmul.f32 %v272_v26, %v1988_v25  ;;  %v264_v31 = vld [vmem:[#allocation5 + $0x10] sm:$0xff]  ;;  %v283_v42 = vld [vmem:[%s1941_s20 + $0x68] sm:$0xff]  ;;  %v282_v43 = vld [vmem:[%s1941_s20 + $0x60] sm:$0xff]  ;;  %p1612_p10 = scmp.ne.s32.totalorder %s2217_s9, %s1611_s5  ;;  %s1615_s27 = sshll.u32 %s1698_s19, 4  ;;  %s1616_s27 = int_to_ptr.vmem [resolvable:$false] %s1615_s27 }
  0x8c   : > { %522 = vperm.xlu1 %1475, %v1962_v11   ;;  %v1995_v28 = vadd.f32 %v295_v23, %v1957_v8  ;;  %v276_v32 = vld [vmem:[%s1941_s20 + $0x30] sm:$0xff]  ;;  %v293_v38 = vmul.f32 %v277_v36, %v1964_v14  ;;  %v294_v41 = vmul.f32 %v278_v40, %v1951_v2  ;;  %v299_v45 = vmul.f32 %v283_v42, %v267_v6  ;;  %v285_v50 = vld [vmem:[%s1941_s20 + $0x78] sm:$0xff]  ;;  %s1617_s6 = scalar_lea.vmem %s1616_s27, 128  ;;  %p1618_p12 = scmp.lt.s32.totalorder %s2217_s9, %s1616_s27 }
  0x8d   : > { %320 = vperm.xlu0 %1474, %v1968_v16   ;;  %v2003_v33 = vadd.f32 %v297_v29, %v1979_v20  ;;  %v2005_v34 = vadd.f32 %v288_v30, %v264_v31  ;;  %v292_v35 = vmul.f32 %v276_v32, %v1988_v25  ;;  %v280_v46 = vld [vmem:[%s1941_s20 + $0x50] sm:$0xff]  ;;  %v298_v47 = vmul.f32 %v282_v43, %v1951_v2  ;;  %v2110_v5 = vld [vmem:[#allocation2] ss:$0 sm:$0xff]  ;;  %p1613_p3 = pnand %p1612_p10, %p1878_p5  ;;  %p1619_p1 = scmp.lt.s32.totalorder %s1617_s6, %s1611_s5 }
  0x8e   : > { %v2019_v39 = vadd.f32 %v293_v38, %v1979_v20  ;;  %v2032_v44 = vadd.f32 %v294_v41, %v1949_v1  ;;  %v2039_v48 = vadd.f32 %v299_v45, %v1957_v8  ;;  %v296_v49 = vmul.f32 %v280_v46, %v1988_v25  ;;  %1308 = vmatprep.mubr.msk.f32.mxu0 %vm388_vm0, %v1968_v16  ;;  %v284_v55 = vld [vmem:[%s1941_s20 + $0x70] sm:$0xff] }
  0x8f   : > { %v2012_v37 = vadd.f32 %v292_v35, %v264_v31  ;;  %v2046_v51 = vadd.f32 %v298_v47, %v1949_v1  ;;  %1322 = vmatprep.mubr.msk.f32.mxu1 %vm388_vm0, %v1962_v11  ;;  %v301_v53 = vmul.f32 %v285_v50, %v1964_v14  ;;  %v300_v56 = vmul.f32 %v284_v55, %v1988_v25  ;;  %p1614_p7 = pneg %p1613_p3  ;;  %p1620_p2 = por %p1619_p1, %p1618_p12 }
  0x90   : > { %527 = vperm.xlu1 %1475, %v1972_v17   ;;  %v2053_v52 = vadd.f32 %v296_v49, %v264_v31 }
  0x91   : > { %325 = vperm.xlu0 %1474, %v1976_v18   ;;  %v2059_v54 = vadd.f32 %v301_v53, %v1979_v20  ;;  %v2070_v58 = vadd.f32 %v300_v56, %v264_v31  ;;  %p1621_p4 = pnand %p1620_p2, %p1614_p7 }
  0x94   : > { %1476 = vset.pattern.permute.xlu1 %v1694_v27 }
  0x95   : > { %335 = vperm.xlu0 %1474, %v1985_v22   ;;  %353 = vperm.xlu1 %1476, %v1976_v18  }
  0x99   : > { %722 = vperm.xlu0 %1474, %v1995_v28   ;;  %545 = vperm.xlu1 %1476, %v1962_v11  }
  0x9d   : > { %732 = vperm.xlu0 %1474, %v2003_v33   ;;  %1477 = vset.pattern.permute.xlu1 %v1693_v0 }
  0x9e   : > { %330 = vperm.xlu1 %1477, %v2005_v34  }
  0xa1   : > { %1482 = vset.pattern.permute.xlu0 %v1694_v27 }
  0xa2   : > { %349 = vperm.xlu0 %1482, %v1968_v16   ;;  %532 = vperm.xlu1 %1477, %v2012_v37  }
  0xa6   : > { %549 = vperm.xlu0 %1482, %v1972_v17   ;;  %537 = vperm.xlu1 %1477, %v2019_v39  }
  0xaa   : > { %357 = vperm.xlu0 %1482, %v2005_v34   ;;  %1478 = vset.pattern.permute.xlu1 %v1694_v27 }
  0xab   : > { %361 = vperm.xlu1 %1478, %v1985_v22  }
  0xae   : > { %557 = vperm.xlu0 %1482, %v2019_v39  }
  0xaf   : > { %553 = vperm.xlu1 %1478, %v2012_v37  }
  0xb2   : > { %740 = vperm.xlu0 %1482, %v2032_v44  }
  0xb3   : > { %1479 = vset.pattern.permute.xlu1 %v1693_v0 }
  0xb4   : > { %717 = vperm.xlu1 %1479, %v2032_v44  }
  0xb6   : > { %939 = vperm.xlu0 %1482, %v2039_v48  }
  0xb8   : > { %912 = vperm.xlu1 %1479, %v2046_v51  }
  0xba   : > { %748 = vperm.xlu0 %1482, %v2053_v52  }
  0xbc   : > { %917 = vperm.xlu1 %1479, %v2039_v48  }
  0xbe   : > { %947 = vperm.xlu0 %1482, %v2059_v54  }
  0xc0   : > { %1480 = vset.pattern.permute.xlu1 %v1694_v27 }
  0xc1   : > { %744 = vperm.xlu1 %1480, %v1995_v28  }
  0xc2   : > { %1485 = vset.pattern.permute.xlu0 %v1695_v57 }
  0xc3   : > { %377 = vperm.xlu0 %1485, %v1976_v18  }
  0xc5   : > { %935 = vperm.xlu1 %1480, %v2046_v51  }
  0xc7   : > { %569 = vperm.xlu0 %1485, %v1962_v11  }
  0xc9   : > { %1481 = vset.pattern.permute.xlu1 %v1693_v0 }
  0xca   : > { %727 = vperm.xlu1 %1481, %v2053_v52  }
  0xcb   : > { %581 = vperm.xlu0 %1485, %v2019_v39  }
  0xce   : > { %922 = vperm.xlu1 %1481, %v2070_v58  }
  0xcf   : > { %768 = vperm.xlu0 %1485, %v1995_v28  }
  0xd2   : > { %927 = vperm.xlu1 %1481, %v2059_v54  }
  0xd3   : > { %963 = vperm.xlu0 %1485, %v2039_v48  }
  0xd6   : > { %1483 = vset.pattern.permute.xlu1 %v1694_v27 }
  0xd7   : > { %752 = vperm.xlu1 %1483, %v2003_v33   ;;  %967 = vperm.xlu0 %1485, %v2070_v58  }
  0xdb   : > { %943 = vperm.xlu1 %1483, %v2070_v58   ;;  %1489 = vset.pattern.permute.xlu0 %v1696_v59 }
  0xdc   : > { %487 = vperm.xlu0 %1489, %v1968_v16  }
  0xdf   : > { %1484 = vset.pattern.permute.xlu1 %v1695_v57 }
  0xe0   : > { %373 = vperm.xlu1 %1484, %v1968_v16   ;;  %499 = vperm.xlu0 %1489, %v1985_v22  }
  0xe4   : > { %381 = vperm.xlu1 %1484, %v2005_v34   ;;  %686 = vperm.xlu0 %1489, %v1972_v17  }
  0xe8   : > { %385 = vperm.xlu1 %1484, %v1985_v22   ;;  %881 = vperm.xlu0 %1489, %v1995_v28  }
  0xec   : > { %1486 = vset.pattern.permute.xlu1 %v1696_v59  ;;  %1072 = vperm.xlu0 %1489, %v2046_v51  }
  0xed   : > { %491 = vperm.xlu1 %1486, %v1976_v18  }
  0xf0   : > { %690 = vperm.xlu0 %1489, %v2012_v37  }
  0xf1   : > { %495 = vperm.xlu1 %1486, %v2005_v34  }
  0xf4   : > { %1080 = vperm.xlu0 %1489, %v2070_v58  }
  0xf5   : > { %1487 = vset.pattern.permute.xlu1 %v1697_v60 }
  0xf6   : > { %516 = vperm.xlu1 %1487, %v1968_v16  }
  0xf8   : > { %889 = vperm.xlu0 %1489, %v2003_v33  }
  0xfa   : > { %1488 = vset.pattern.permute.xlu1 %v1695_v57 }
  0xfb   : > { %573 = vperm.xlu1 %1488, %v1972_v17  }
  0xfc   : > { %1495 = vset.pattern.permute.xlu0 %v1697_v60 }
  0xfd   : > { %711 = vperm.xlu0 %1495, %v1962_v11  }
  0xff   : > { %577 = vperm.xlu1 %1488, %v2012_v37  }
 0x103   : > { %764 = vperm.xlu1 %1488, %v2032_v44  }
 0x107   : > { %959 = vperm.xlu1 %1488, %v2046_v51  }
 0x10b   : > { %v523_v61 = vpop.permute.xlu1 %522  ;;  %772 = vperm.xlu1 %1488, %v2053_v52  }
 0x10c   : > { %v321_v62 = vpop.permute.xlu0 %320  ;;  %v540_v13 = vmul.f32 %v2110_v5, %v523_v61 }
 0x10d   : > { %v344_v9 = vmul.f32 %v2110_v5, %v321_v62 }
 0x10f   : > { %v528_v63 = vpop.permute.xlu1 %527  ;;  %1490 = vset.pattern.permute.xlu1 %v1696_v59 }
 0x110   : > { %v326_v0 = vpop.permute.xlu0 %325  ;;  %682 = vperm.xlu1 %1490, %v1962_v11   ;;  %v541_v15 = vmul.f32 %v2110_v5, %v528_v63 }
 0x111   : > { %v345_v6 = vmul.f32 %v2110_v5, %v326_v0 }
 0x114   : > { %v354_v1 = vpop.permute.xlu1 %353  ;;  %v336_v2 = vpop.permute.xlu0 %335  ;;  %1491 = vset.pattern.permute.xlu1 %v1695_v57 }
 0x115   : > { %776 = vperm.xlu1 %1491, %v2003_v33   ;;  %v365_v10 = vadd.f32 %v354_v1, %v345_v6  ;;  %v347_v26 = vmul.f32 %v2110_v5, %v336_v2 }
 0x117   : > { %v369_v16 = vmax.f32 %v365_v10, 0.0 }
 0x118   : > { %v546_v3 = vpop.permute.xlu1 %545  ;;  %v2107_v4 = vpop.permute.xlu0 %722 }
 0x119   : > { %1492 = vset.pattern.permute.xlu1 %v1696_v59  ;;  %v560_v19 = vadd.f32 %v546_v3, %v540_v13 }
 0x11a   : > { %877 = vperm.xlu1 %1492, %v2032_v44  }
 0x11b   : > { %v564_v27 = vmax.f32 %v560_v19, 0.0 }
 0x11c   : > { %v2113_v7 = vpop.permute.xlu0 %732 }
 0x11d   : > { %v331_v8 = vpop.permute.xlu1 %330 }
 0x11e   : > { %1493 = vset.pattern.permute.xlu1 %v1695_v57  ;;  %v346_v29 = vmul.f32 %v2110_v5, %v331_v8 }
 0x11f   : > { %971 = vperm.xlu1 %1493, %v2059_v54  }
 0x121   : > { %v350_v11 = vpop.permute.xlu0 %349  ;;  %v533_v12 = vpop.permute.xlu1 %532 }
 0x122   : > { %v364_v14 = vadd.f32 %v350_v11, %v344_v9  ;;  %v542_v41 = vmul.f32 %v2110_v5, %v533_v12 }
 0x123   : > { %1494 = vset.pattern.permute.xlu1 %v1696_v59 }
 0x124   : > { %v368_v20 = vmax.f32 %v364_v14, 0.0  ;;  %1076 = vperm.xlu1 %1494, %v2039_v48   ;;  %v738_v14 = vmul.f32 %v2110_v5, %v2113_v7 }
 0x125   : > { %v550_v21 = vpop.permute.xlu0 %549  ;;  %v538_v23 = vpop.permute.xlu1 %537 }
 0x126   : > { %v561_v24 = vadd.f32 %v550_v21, %v541_v15  ;;  %v1356_v25 = vpack.c.bf16 %v369_v16, %v368_v20  ;;  %v543_v40 = vmul.f32 %v2110_v5, %v538_v23 }
 0x128   : > { %v565_v30 = vmax.f32 %v561_v24, 0.0  ;;  %1357 = vmatprep.subr.bf16.mxu0 %v1356_v25  ;;  %885 = vperm.xlu1 %1494, %v2053_v52  }
 0x129   : > { %v358_v31 = vpop.permute.xlu0 %357  ;;  %1359 = vmatpush3.bf16.msra.mxu0 %v1356_v25 }
 0x12a   : > { %v366_v32 = vadd.f32 %v358_v31, %v346_v29  ;;  %v362_v35 = vpop.permute.xlu1 %361  ;;  %v1364_v36 = vpack.c.bf16 %v565_v30, %v564_v27 }
 0x12b   : > { %v367_v38 = vadd.f32 %v362_v35, %v347_v26 }
 0x12c   : > { %1365 = vmatprep.subr.bf16.mxu1 %v1364_v36  ;;  %694 = vperm.xlu1 %1494, %v2019_v39   ;;  %v370_v42 = vmax.f32 %v366_v32, 0.0 }
 0x12d   : > { %v371_v43 = vmax.f32 %v367_v38, 0.0  ;;  %v558_v45 = vpop.permute.xlu0 %557  ;;  %1367 = vmatpush3.bf16.msra.mxu1 %v1364_v36 }
 0x12e   : > { %v563_v46 = vadd.f32 %v558_v45, %v543_v40  ;;  %v554_v47 = vpop.permute.xlu1 %553 }
 0x12f   : > { %v1360_v49 = vpack.c.bf16 %v371_v43, %v370_v42  ;;  %v562_v50 = vadd.f32 %v554_v47, %v542_v41 }
 0x130   : > { %1084 = vperm.xlu1 %1494, %v2059_v54   ;;  %v567_v53 = vmax.f32 %v563_v46, 0.0 }
 0x131   : > { %v566_v55 = vmax.f32 %v562_v50, 0.0  ;;  %1361 = vmatprep.subr.bf16.mxu0 %v1360_v49 }
 0x132   : > { %1363 = vmatpush3.bf16.msra.mxu0 %v1360_v49 }
 0x133   : > { %v1368_v56 = vpack.c.bf16 %v567_v53, %v566_v55  ;;  %v718_v57 = vpop.permute.xlu1 %717 }
 0x134   : > { %1496 = vset.pattern.permute.xlu1 %v1697_v60 }
 0x135   : > { %1309 = vmatmul.mubr.msk.f32.vlgmr.msra.gmra.mrb[0].mxu0 %vm388_vm0, %v1976_v18  ;;  %1369 = vmatprep.subr.bf16.mxu1 %v1368_v56  ;;  %v735_v18 = vmul.f32 %v2110_v5, %v718_v57 }
 0x136   : > { %1371 = vmatpush3.bf16.msra.mxu1 %v1368_v56  ;;  %1311 = vmatprep.mubr.msk.f32.mxu0 %vm388_vm0, %v2005_v34  ;;  %v741_v34 = vpop.permute.xlu0 %740 }
 0x137   : > { %v913_v59 = vpop.permute.xlu1 %912  ;;  %906 = vperm.xlu1 %1496, %v2032_v44  }
 0x138   : > { %v930_v0 = vmul.f32 %v2110_v5, %v913_v59 }
 0x139   : > { %1312 = vmatmul.mubr.msk.f32.gmra.mrb[2].mxu0 %vm388_vm0, %v1985_v22  ;;  %1323 = vmatmul.mubr.msk.f32.vlgmr.msra.gmra.mrb[0].mxu1 %vm388_vm0, %v1972_v17  ;;  %v736_v17 = vmul.f32 %v2110_v5, %v2107_v4  ;;  %v755_v22 = vadd.f32 %v741_v34, %v735_v18 }
 0x13a   : > { %1325 = vmatprep.mubr.msk.f32.mxu1 %vm388_vm0, %v2012_v37  ;;  %1336 = vmatprep.mubr.msk.f32.mxu0 %vm388_vm0, %v2032_v44  ;;  %v940_v62 = vpop.permute.xlu0 %939 }
 0x13b   : > { %v918_v60 = vpop.permute.xlu1 %917  ;;  %1101 = vperm.xlu1 %1496, %v2046_v51   ;;  %v759_v63 = vmax.f32 %v755_v22, 0.0 }
 0x13c   : > { %v931_v37 = vmul.f32 %v2110_v5, %v918_v60 }
 0x13d   : > { %1326 = vmatmul.mubr.msk.f32.gmra.mrb[2].mxu1 %vm388_vm0, %v2019_v39 }
 0x13e   : > { %1350 = vmatprep.mubr.msk.f32.mxu1 %vm388_vm0, %v2046_v51  ;;  %v951_v1 = vadd.f32 %v940_v62, %v931_v37  ;;  %v749_v13 = vpop.permute.xlu0 %748 }
 0x140   : > { %v745_v61 = vpop.permute.xlu1 %744  ;;  %v955_v8 = vmax.f32 %v951_v1, 0.0 }
 0x141   : > { %v756_v44 = vadd.f32 %v745_v61, %v736_v17 }
 0x142   : > { %v948_v21 = vpop.permute.xlu0 %947 }
 0x143   : > { %v760_v2 = vmax.f32 %v756_v44, 0.0 }
 0x144   : > { %v936_v3 = vpop.permute.xlu1 %935 }
 0x145   : > { %v1372_v6 = vpack.c.bf16 %v760_v2, %v759_v63  ;;  %v950_v39 = vadd.f32 %v936_v3, %v930_v0 }
 0x147   : > { %v954_v9 = vmax.f32 %v950_v39, 0.0  ;;  %1373 = vmatprep.subr.bf16.mxu0 %v1372_v6 }
 0x148   : > { %1375 = vmatpush3.bf16.msra.mxu0 %v1372_v6 }
 0x149   : > { %v1380_v51 = vpack.c.bf16 %v955_v8, %v954_v9  ;;  %v728_v4 = vpop.permute.xlu1 %727 }
 0x14a   : > { %v737_v11 = vmul.f32 %v2110_v5, %v728_v4 }
 0x14b   : > { %1381 = vmatprep.subr.bf16.mxu1 %v1380_v51 }
 0x14c   : > { %1383 = vmatpush3.bf16.msra.mxu1 %v1380_v51  ;;  %v757_v15 = vadd.f32 %v749_v13, %v737_v11 }
 0x14d   : > { %v923_v10 = vpop.permute.xlu1 %922 }
 0x14e   : > { %v761_v23 = vmax.f32 %v757_v15, 0.0  ;;  %v932_v24 = vmul.f32 %v2110_v5, %v923_v10 }
 0x151   : > { %v928_v12 = vpop.permute.xlu1 %927 }
 0x152   : > { %v933_v16 = vmul.f32 %v2110_v5, %v928_v12 }
 0x154   : > { %v953_v25 = vadd.f32 %v948_v21, %v933_v16 }
 0x156   : > { %v753_v19 = vpop.permute.xlu1 %752  ;;  %v957_v31 = vmax.f32 %v953_v25, 0.0 }
 0x157   : > { %v758_v20 = vadd.f32 %v753_v19, %v738_v14 }
 0x159   : > { %v762_v26 = vmax.f32 %v758_v20, 0.0 }
 0x15a   : > { %v944_v27 = vpop.permute.xlu1 %943 }
 0x15b   : > { %v1376_v29 = vpack.c.bf16 %v762_v26, %v761_v23  ;;  %v952_v30 = vadd.f32 %v944_v27, %v932_v24 }
 0x15d   : > { %v956_v32 = vmax.f32 %v952_v30, 0.0  ;;  %1377 = vmatprep.subr.bf16.mxu0 %v1376_v29 }
 0x15e   : > { %1379 = vmatpush3.bf16.msra.mxu0 %v1376_v29 }
 0x15f   : > { %v1384_v35 = vpack.c.bf16 %v957_v31, %v956_v32  ;;  %v374_v5 = vpop.permute.xlu1 %373 }
 0x161   : > { %1337 = vmatmul.mubr.msk.f32.vlgmr.msra.gmra.mrb[4].mxu0 %vm388_vm0, %v1995_v28  ;;  %1385 = vmatprep.subr.bf16.mxu1 %v1384_v35 }
 0x162   : > { %1387 = vmatpush3.bf16.msra.mxu1 %v1384_v35  ;;  %1339 = vmatprep.mubr.msk.f32.mxu0 %vm388_vm0, %v2053_v52  ;;  %v378_v52 = vpop.permute.xlu0 %377 }
 0x163   : > { %v382_v7 = vpop.permute.xlu1 %381 }
 0x165   : > { %1340 = vmatmul.mubr.msk.f32.gmra.mrb[6].mxu0 %vm388_vm0, %v2003_v33  ;;  %1351 = vmatmul.mubr.msk.f32.vlgmr.msra.gmra.mrb[4].mxu1 %vm388_vm0, %v2039_v48 }
 0x166   : > { %1353 = vmatprep.mubr.msk.f32.mxu1 %vm388_vm0, %v2070_v58  ;;  %v570_v42 = vpop.permute.xlu0 %569 }
 0x167   : > { %v386_v28 = vpop.permute.xlu1 %385 }
 0x169   : > { %1354 = vmatmul.mubr.msk.f32.gmra.mrb[6].mxu1 %vm388_vm0, %v2059_v54 }
 0x16a   : > { %v582_v43 = vpop.permute.xlu0 %581 }
 0x16c   : > { %v492_v36 = vpop.permute.xlu1 %491 }
 0x16e   : > { %v2172_v48 = vpop.permute.xlu0 %768 }
 0x170   : > { %v496_v38 = vpop.permute.xlu1 %495 }
 0x172   : > { %v2176_v46 = vpop.permute.xlu0 %963 }
 0x175   : > { %v2168_v40 = vpop.permute.xlu1 %516 }
 0x176   : > { %v2180_v47 = vpop.permute.xlu0 %967 }
 0x17a   : > { %v574_v41 = vpop.permute.xlu1 %573  ;;  %v488_v50 = vpop.permute.xlu0 %487 }
 0x17e   : > { %v578_v33 = vpop.permute.xlu1 %577  ;;  %v500_v55 = vpop.permute.xlu0 %499 }
 0x182   : > { %v2170_v45 = vpop.permute.xlu1 %764  ;;  %v687_v57 = vpop.permute.xlu0 %686 }
 0x186   : > { %v2174_v58 = vpop.permute.xlu1 %959  ;;  %v2188_v18 = vpop.permute.xlu0 %881 }
 0x18a   : > { %v2178_v54 = vpop.permute.xlu1 %772  ;;  %v2192_v44 = vpop.permute.xlu0 %1072 }
 0x18e   : > { %v691_v26 = vpop.permute.xlu0 %690 }
 0x18f   : > { %v683_v49 = vpop.permute.xlu1 %682 }
 0x194   : > { %v2182_v53 = vpop.permute.xlu1 %776 }
 0x199   : > { %v2184_v56 = vpop.permute.xlu1 %877 }
 0x19e   : > { %v2186_v59 = vpop.permute.xlu1 %971 }
 0x1a3   : > { %v2190_v22 = vpop.permute.xlu1 %1076 }
 0x1a7   : > { %v2194_v11 = vpop.permute.xlu1 %885 }
 0x1ab   : > { %v695_v32 = vpop.permute.xlu1 %694 }
 0x208   : > { %v1310_v60 = vpop.f32.mrb[0].mxu0 }
 0x209   : > { %v469_v34 = vadd.f32 %v1310_v60, %v378_v52  ;;  %v463_v17 = vpop.f32.mrb[1].mxu0  ;;  %v1081_v52 = vpop.permute.xlu0 %1080 }
 0x20a   : > { %v464_v37 = vadd.f32 %v463_v17, %v374_v5 }
 0x20b   : > { %v483_v61 = vmax.f32 %v469_v34, 0.0 }
 0x20c   : > { %v482_v62 = vmax.f32 %v464_v37, 0.0  ;;  %v1313_v63 = vpop.f32.mrb[2].mxu0  ;;  %v1324_v0 = vpop.f32.mrb[0].mxu1 }
 0x20d   : > { %v503_v1 = vmul.f32 %v492_v36, %v483_v61  ;;  %v479_v2 = vadd.f32 %v1313_v63, %v386_v28  ;;  %v473_v3 = vpop.f32.mrb[3].mxu0  ;;  %v664_v6 = vadd.f32 %v1324_v0, %v574_v41  ;;  %v658_v39 = vpop.f32.mrb[1].mxu1 }
 0x20e   : > { %v502_v8 = vmul.f32 %v488_v50, %v482_v62  ;;  %v474_v9 = vadd.f32 %v473_v3, %v382_v7  ;;  %v659_v51 = vadd.f32 %v658_v39, %v570_v42  ;;  %v890_v50 = vpop.permute.xlu0 %889 }
 0x20f   : > { %v485_v4 = vmax.f32 %v479_v2, 0.0  ;;  %v678_v10 = vmax.f32 %v664_v6, 0.0 }
 0x210   : > { %v506_v12 = vadd.f32 %v503_v1, %v502_v8  ;;  %v484_v13 = vmax.f32 %v474_v9, 0.0  ;;  %v677_v14 = vmax.f32 %v659_v51, 0.0  ;;  %v1327_v15 = vpop.f32.mrb[2].mxu1 }
 0x211   : > { %v698_v16 = vmul.f32 %v687_v57, %v678_v10  ;;  %v674_v19 = vadd.f32 %v1327_v15, %v582_v43  ;;  %v668_v20 = vpop.f32.mrb[3].mxu1  ;;  %v505_v25 = vmul.f32 %v500_v55, %v485_v4 }
 0x212   : > { %v504_v21 = vmul.f32 %v496_v38, %v484_v13  ;;  %v697_v23 = vmul.f32 %v683_v49, %v677_v14  ;;  %v669_v24 = vadd.f32 %v668_v20, %v578_v33  ;;  %v712_v61 = vpop.permute.xlu0 %711 }
 0x213   : > { %v680_v29 = vmax.f32 %v674_v19, 0.0 }
 0x214   : > { %v507_v27 = vadd.f32 %v506_v12, %v504_v21  ;;  %v679_v30 = vmax.f32 %v669_v24, 0.0  ;;  %v701_v31 = vadd.f32 %v698_v16, %v697_v23 }
 0x215   : > { %v700_v28 = vmul.f32 %v695_v32, %v680_v29 }
 0x216   : > { %v508_v35 = vadd.f32 %v507_v27, %v505_v25  ;;  %v699_v5 = vmul.f32 %v691_v26, %v679_v30 }
 0x218   : > { %v509_v7 = vrot.slane %v508_v35, 4  ;;  %v702_v36 = vadd.f32 %v701_v31, %v699_v5  ;;  %v1085_v31 = vpop.permute.xlu1 %1084 }
 0x21a   : > { %v510_v41 = vadd.f32 %v509_v7, %v508_v35  ;;  %v703_v42 = vadd.f32 %v702_v36, %v700_v28 }
 0x21c   : > { %v511_v43 = vrot.slane %v510_v41, 2  ;;  %v704_v38 = vrot.slane %v703_v42, 4 }
 0x21e   : > { %v512_v49 = vadd.f32 %v511_v43, %v510_v41  ;;  %v705_v33 = vadd.f32 %v704_v38, %v703_v42  ;;  %v907_v41 = vpop.permute.xlu1 %906 }
 0x220   : > { %v513_v55 = vrot.slane %v512_v49, 1  ;;  %v706_v57 = vrot.slane %v705_v33, 2 }
 0x222   : > { %v514_v60 = vadd.f32 %v513_v55, %v512_v49  ;;  %v707_v34 = vadd.f32 %v706_v57, %v705_v33  ;;  %v1102_v33 = vpop.permute.xlu1 %1101 }
 0x224   : > { %v519_v17 = vadd.f32 %v2168_v40, %v514_v60  ;;  %v708_v37 = vrot.slane %v707_v34, 1 }
 0x226   : > { %v709_v62 = vadd.f32 %v708_v37, %v707_v34  ;;  %1105 = vst [vmem:[%s2198_s7] sm:$0x1] %v519_v17 }
 0x228   : > { %v714_v63 = vadd.f32 %v712_v61, %v709_v62 }
 0x22a   : > { %1106 = vst [vmem:[%s2198_s7 + $0x1] sm:$0x1] %v714_v63 }
 0x234   : > { %v1338_v0 = vpop.f32.mrb[4].mxu0 }
 0x235   : > { %v859_v1 = vadd.f32 %v1338_v0, %v2172_v48  ;;  %v853_v2 = vpop.f32.mrb[5].mxu0 }
 0x236   : > { %v854_v3 = vadd.f32 %v853_v2, %v2170_v45 }
 0x237   : > { %v873_v6 = vmax.f32 %v859_v1, 0.0 }
 0x238   : > { %v872_v39 = vmax.f32 %v854_v3, 0.0  ;;  %v1341_v8 = vpop.f32.mrb[6].mxu0  ;;  %v1352_v40 = vpop.f32.mrb[4].mxu1 }
 0x239   : > { %v893_v9 = vmul.f32 %v2188_v18, %v873_v6  ;;  %v869_v51 = vadd.f32 %v1341_v8, %v2182_v53  ;;  %v1054_v4 = vadd.f32 %v1352_v40, %v2176_v46  ;;  %v863_v10 = vpop.f32.mrb[7].mxu0  ;;  %v1048_v12 = vpop.f32.mrb[5].mxu1 }
 0x23a   : > { %v892_v13 = vmul.f32 %v2184_v56, %v872_v39  ;;  %v864_v14 = vadd.f32 %v863_v10, %v2178_v54  ;;  %v1049_v48 = vadd.f32 %v1048_v12, %v2174_v58 }
 0x23b   : > { %v875_v15 = vmax.f32 %v869_v51, 0.0  ;;  %v1068_v45 = vmax.f32 %v1054_v4, 0.0 }
 0x23c   : > { %v896_v16 = vadd.f32 %v893_v9, %v892_v13  ;;  %v874_v19 = vmax.f32 %v864_v14, 0.0  ;;  %v1067_v20 = vmax.f32 %v1049_v48, 0.0  ;;  %v1355_v21 = vpop.f32.mrb[6].mxu1 }
 0x23d   : > { %v1088_v18 = vmul.f32 %v2190_v22, %v1068_v45  ;;  %v1064_v53 = vadd.f32 %v1355_v21, %v2186_v59  ;;  %v1058_v23 = vpop.f32.mrb[7].mxu1  ;;  %v895_v54 = vmul.f32 %v890_v50, %v875_v15 }
 0x23e   : > { %v894_v46 = vmul.f32 %v2194_v11, %v874_v19  ;;  %v1087_v24 = vmul.f32 %v2192_v44, %v1067_v20  ;;  %v1059_v56 = vadd.f32 %v1058_v23, %v2180_v47 }
 0x23f   : > { %v1070_v26 = vmax.f32 %v1064_v53, 0.0 }
 0x240   : > { %v897_v25 = vadd.f32 %v896_v16, %v894_v46  ;;  %v1091_v58 = vadd.f32 %v1088_v18, %v1087_v24  ;;  %v1069_v27 = vmax.f32 %v1059_v56, 0.0 }
 0x241   : > { %v1090_v32 = vmul.f32 %v1085_v31, %v1070_v26 }
 0x242   : > { %v898_v29 = vadd.f32 %v897_v25, %v895_v54  ;;  %v1089_v30 = vmul.f32 %v1081_v52, %v1069_v27 }
 0x244   : > { %v1092_v22 = vadd.f32 %v1091_v58, %v1089_v30  ;;  %v899_v59 = vrot.slane %v898_v29, 4 }
 0x246   : > { %v1093_v35 = vadd.f32 %v1092_v22, %v1090_v32  ;;  %v900_v11 = vadd.f32 %v899_v59, %v898_v29 }
 0x248   : > { %v901_v5 = vrot.slane %v900_v11, 2  ;;  %v1094_v44 = vrot.slane %v1093_v35, 4 }
 0x24a   : > { %v902_v7 = vadd.f32 %v901_v5, %v900_v11  ;;  %v1095_v47 = vadd.f32 %v1094_v44, %v1093_v35 }
 0x24c   : > { %v903_v28 = vrot.slane %v902_v7, 1  ;;  %v1096_v36 = vrot.slane %v1095_v47, 2 }
 0x24e   : > { %v904_v42 = vadd.f32 %v903_v28, %v902_v7  ;;  %v1097_v52 = vadd.f32 %v1096_v36, %v1095_v47 }
 0x250   : > { %v909_v43 = vadd.f32 %v907_v41, %v904_v42  ;;  %v1098_v38 = vrot.slane %v1097_v52, 1 }
 0x252   : > { %1107 = vst [vmem:[%s2198_s7 + $0x2] sm:$0x1] %v909_v43  ;;  %v1099_v49 = vadd.f32 %v1098_v38, %v1097_v52 }
 0x254   : > { %v1104_v50 = vadd.f32 %v1102_v33, %v1099_v49 }
 0x256   : > { %1108 = vst [vmem:[%s2198_s7 + $0x3] sm:$0x1] %v1104_v50 }
 0x257   : > { %1624 = shalt.err (!%p1621_p4)
}
 0x258   : > { %s1625_s8 = scalar_lea.hbm %s2223_s29, 64  ;;  %s1629_s14 = scalar_lea.hbm %s2272_s4, 128 }
 0x259   : > { %p1626_p9 = scmp.ne.s32.totalorder %s2223_s29, %s1625_s8  ;;  %p1630_p13 = scmp.lt.u32.totalorder %s2223_s29, %s2272_s4 }
 0x25a   : > { %p1631_p6 = scmp.lt.u32.totalorder %s1629_s14, %s1625_s8  ;;  %p1633_p10 = scmp.lt.u32.totalorder %s1625_s8, %s2223_s29 }
 0x25b   : > { %p1627_p0 = pnand %p1626_p9, %p1878_p5 }
 0x25c   : > { %p1632_p11 = por %p1631_p6, %p1630_p13 }
 0x25d   : > { %p1628_p8 = pneg %p1627_p0 }
 0x25e   : > { %p1634_p3 = por %p1633_p10, %p1632_p11 }
 0x260   : > { %p1635_p7 = pnand %p1634_p3, %p1628_p8 }
 0x262   : > { %1638 = shalt.err (!%p1635_p7)
}
 0x263   : > { %s1699_s7 = smov 16   ;;  %s1700_s28 = smov 1  }
 0x264   : > { %1402 = dma.vmem_to_hbm [thread:$0]  (%p1878_p5), %s2217_s9, 64, %s2223_s29, %s1110_s30, %s1699_s7, %s1699_s7, %s1700_s28  }
 0x265 PF: > { %s1138_s25 = sand.u32 1, %s1673_s15   ;;  %p2290_p12 = scmp.ne.s32.totalorder %s2277_s22, 0 }
 0x266   : > { %p2291_p1 = scmp.ge.s32.totalorder %s1685_s18, 2  ;;  %s1139_s12 = scalar_lea.sflag [#allocation4], %s1138_s25 }
 0x268   : > { %p1419_p2 = pnand %p2291_p1, %p2290_p12 }
 0x26a   : > { %1668 = dma.done.wait (!%p1419_p2), %s1139_s12, 64  }
 0x26b   : > { %1670 = vsyncadd (!%p1419_p2), %s1139_s12, 4294967232  ;;  %p19_p4 = scmp.ge.s32.totalorder %s1864_s10, 4   ;;  %s2292_s15 = smov %s1677_s16 }
 0x26c   : > { %s2293_s16 = smov %s1681_s17  ;;  %s2294_s17 = smov %s1874_s13 }
 0x26d   : > { %s2295_s18 = smov %s1864_s10  ;;  %21 = sbr.rel (!%p19_p4) target bundleno = 7 (0x7), region = 94 }
 0x274   :  { %1144 = vsyncpa [#allocation3], 1 }
 0x275   :  { %1146 = vsyncpa [#allocation3 + $0x1], 1 }
 0x276   :  { %1147 = vsyncpa [#allocation6], 1 }
 0x277   :  { %1148 = vsyncpa [#allocation9], 1 }
 0x278   :  { %1150 = vsyncpa [#allocation9 + $0x1], 1 }
 0x279   :  { %1151 = vsyncpa [#allocation4], 1 }
 0x27a   :  { %1153 = vsyncpa [#allocation4 + $0x1], 1 }

</bundles_post_ra>
